<compile_context>
chip_gen: v5e
topology: v5e:2x2
jax: 0.10.0
libtpu: 0.0.40
codegen_flags: <defaults>
</compile_context>

<pallas_src>
import jax
import jax.numpy as jnp
from jax.experimental import pallas as pl
from jax.experimental.pallas import tpu as pltpu


# --------------------------------------------------------------------------
# Pallas kernel (fused forward)
# --------------------------------------------------------------------------

def _make_fused_kernel(V, hid_off, latent_dim, sum_vs, mu_off, out_pad):
    """Builds the fused CVAE forward kernel for V views.

    Ref order (inputs):
      v_0..v_{V-1}, labels, eps,
      enc_w1v_0..enc_w1v_{V-1}, enc_w1c_all, enc_b1_all,
      (enc_w2_i, enc_b2_i) * V,
      att_w, att_b,
      dec_w1z_all, dec_w1c_all, dec_b1_all,
      dec_w2_blockdiag, dec_b2_all
    followed by the single packed output ref.
    """
    L = latent_dim
    bf = jnp.bfloat16

    def kernel(*refs):
        it = iter(refs)
        v_refs = [next(it) for _ in range(V)]
        labels_ref = next(it)
        eps_ref = next(it)
        enc_w1v = [next(it) for _ in range(V)]
        enc_w1c_all = next(it)
        enc_b1_all = next(it)
        enc_w2, enc_b2 = [], []
        for _ in range(V):
            enc_w2.append(next(it))
            enc_b2.append(next(it))
        att_w = next(it)
        att_b = next(it)
        dec_w1z_all = next(it)
        dec_w1c_all = next(it)
        dec_b1_all = next(it)
        dec_w2_bd = next(it)
        dec_b2_all = next(it)
        o_ref = next(it)

        B = o_ref.shape[0]
        labels = labels_ref[...]                                   # (B, C) bf16

        # ----- encoders: Linear -> Dropout(id, eval) -> ReLU -> latent Linear
        # Condition (labels) contribution for ALL views in one MXU dot.
        cond_all = (jnp.dot(labels, enc_w1c_all[...],
                            preferred_element_type=jnp.float32)
                    + enc_b1_all[...])                             # (B, sum_hid) f32

        lats = []
        for i in range(V):
            h = jnp.dot(v_refs[i][...], enc_w1v[i][...],
                        preferred_element_type=jnp.float32)
            h = h + cond_all[:, hid_off[i]:hid_off[i + 1]]
            h = jnp.maximum(h, 0.0)                                # ReLU
            lat = (jnp.dot(h.astype(bf), enc_w2[i][...],
                           preferred_element_type=jnp.float32)
                   + enc_b2[i][...])                               # (B, L) f32
            lats.append(lat)

        # ----- contextualized attention: softmax over the view axis
        m = lats[0]
        for i in range(1, V):
            m = jnp.maximum(m, lats[i])
        exps = [jnp.exp(l - m) for l in lats]
        den = exps[0]
        num = exps[0] * lats[0]
        for i in range(1, V):
            den = den + exps[i]
            num = num + exps[i] * lats[i]
        combined = num / den                                       # (B, L) f32

        # Fused mean / log-var projection (single (L, 2L) dot).
        mulv = (jnp.dot(combined.astype(bf), att_w[...],
                        preferred_element_type=jnp.float32)
                + att_b[...])                                      # (B, 2L) f32
        mu = mulv[:, :L]
        logvar = mulv[:, L:2 * L]

        # ----- reparameterize: z = mu + eps * exp(0.5 * logvar)
        z = mu + eps_ref[...] * jnp.exp(0.5 * logvar)

        # ----- decoders: Linear -> Dropout(id) -> ReLU -> Linear
        # First layers of ALL decoders in two dots (shared [z, labels] input).
        h_dec = (jnp.dot(z.astype(bf), dec_w1z_all[...],
                         preferred_element_type=jnp.float32)
                 + jnp.dot(labels, dec_w1c_all[...],
                           preferred_element_type=jnp.float32)
                 + dec_b1_all[...])                                # (B, sum_hid) f32
        h_dec = jnp.maximum(h_dec, 0.0).astype(bf)
        # Second layers of ALL decoders via one block-diagonal dot ->
        # lane-contiguous (B, sum_vs) decoder output slab.
        dec_slab = (jnp.dot(h_dec, dec_w2_bd[...],
                            preferred_element_type=jnp.float32)
                    + dec_b2_all[...])                             # (B, sum_vs) f32

        # ----- packed, lane-dense output slab:
        #   [0, sum_vs)            decoder outputs
        #   [mu_off, mu_off + 2L)  mu | logvar   (mu_off is 128-aligned)
        o_ref[...] = jnp.zeros((B, out_pad), jnp.float32)
        o_ref[:, 0:sum_vs] = dec_slab
        o_ref[:, mu_off:mu_off + 2 * L] = mulv

    return kernel


# --------------------------------------------------------------------------
# Wrappers (pallas_call plumbing)
# --------------------------------------------------------------------------

def _full_spec(shape):
    # Whole-array block; grid=(1,) so index_map takes one (ignored) grid index.
    n = len(shape)
    return pl.BlockSpec(shape, lambda i, _n=n: (0,) * _n)


def _round_up(x, m):
    return ((x + m - 1) // m) * m


def _block_diag(mats):
    """Dense block-diagonal matrix from a list of 2-D arrays (host-side pack)."""
    rows = sum(m.shape[0] for m in mats)
    cols = sum(m.shape[1] for m in mats)
    out = jnp.zeros((rows, cols), mats[0].dtype)
    r = c = 0
    for m in mats:
        out = out.at[r:r + m.shape[0], c:c + m.shape[1]].set(m)
        r += m.shape[0]
        c += m.shape[1]
    return out


def make_forward(view_sizes, condi_size, hidden_mult, latent_dim):
    """Returns a jitted forward(views, labels, eps, packed) -> (decoders, mu, logvar)."""
    V = len(view_sizes)
    L = latent_dim
    hidden_sizes = [int(hidden_mult * vs) for vs in view_sizes]

    hid_off = [0]
    for h in hidden_sizes:
        hid_off.append(hid_off[-1] + h)

    vs_off = [0]
    for vs in view_sizes:
        vs_off.append(vs_off[-1] + vs)
    sum_vs = vs_off[-1]

    mu_off = _round_up(sum_vs, 128)            # keep mu/logvar store 128-aligned
    out_pad = _round_up(mu_off + 2 * L, 128)   # lane-dense output slab width

    kernel = _make_fused_kernel(V, hid_off, L, sum_vs, mu_off, out_pad)

    @jax.jit
    def forward(views, labels, eps, packed):
        B = views[0].shape[0]
        bf = jnp.bfloat16

        args = [v.astype(bf) for v in views]
        args += [labels.astype(bf), eps.astype(jnp.float32)]
        args += list(packed["enc_w1v"])
        args += [packed["enc_w1c_all"], packed["enc_b1_all"]]
        for w2, b2 in zip(packed["enc_w2"], packed["enc_b2"]):
            args += [w2, b2]
        args += [packed["att_w"], packed["att_b"],
                 packed["dec_w1z_all"], packed["dec_w1c_all"], packed["dec_b1_all"],
                 packed["dec_w2_bd"], packed["dec_b2_all"]]

        out = pl.pallas_call(
            kernel,
            grid=(1,),
            in_specs=[_full_spec(a.shape) for a in args],
            out_specs=_full_spec((B, out_pad)),
            out_shape=jax.ShapeDtypeStruct((B, out_pad), jnp.float32),
            compiler_params=pltpu.CompilerParams(
                dimension_semantics=("arbitrary",)),
        )(*args)

        decoders = [out[:, vs_off[i]:vs_off[i + 1]] for i in range(V)]
        mu = out[:, mu_off:mu_off + L]
        logvar = out[:, mu_off + L:mu_off + 2 * L]
        return decoders, mu, logvar

    return forward


# --------------------------------------------------------------------------
# Parameters: torch-like init + one-time packing for the fused kernel
# --------------------------------------------------------------------------

def init_params(key, view_sizes, condi_size, hidden_mult, latent_dim):
    params = {"enc": [], "dec": []}
    keys = jax.random.split(key, 4 * len(view_sizes) + 2)
    ki = 0

    def lin(k, din, dout):
        kw, kb = jax.random.split(k)
        w = jax.random.normal(kw, (din, dout), jnp.float32) * 0.05
        b = jax.random.normal(kb, (1, dout), jnp.float32) * 0.01
        return w, b

    for vs in view_sizes:
        hidden = int(hidden_mult * vs)
        # encoder: Linear(vs + condi -> hidden)  then latent: Linear(hidden -> L)
        w1, b1 = lin(keys[ki], vs + condi_size, hidden); ki += 1
        w2, b2 = lin(keys[ki], hidden, latent_dim); ki += 1
        params["enc"].append((w1, b1, w2, b2))
        # decoder: Linear(L + condi -> hidden), Linear(hidden -> vs)
        w1d, b1d = lin(keys[ki], latent_dim + condi_size, hidden); ki += 1
        w2d, b2d = lin(keys[ki], hidden, vs); ki += 1
        params["dec"].append((w1d, b1d, w2d, b2d))

    params["att_mean"] = lin(keys[ki], latent_dim, latent_dim); ki += 1
    params["att_logvar"] = lin(keys[ki], latent_dim, latent_dim); ki += 1
    return params


def pack_params(params, view_sizes, condi_size, latent_dim):
    """One-time weight re-layout + bf16 cast for the fused kernel."""
    L = latent_dim
    bf = jnp.bfloat16

    enc_w1v, enc_w1c, enc_b1, enc_w2, enc_b2 = [], [], [], [], []
    for i, vs in enumerate(view_sizes):
        w1, b1, w2, b2 = params["enc"][i]
        enc_w1v.append(w1[:vs, :].astype(bf))      # view part
        enc_w1c.append(w1[vs:, :].astype(bf))      # condition (labels) part
        enc_b1.append(b1)
        enc_w2.append(w2.astype(bf))
        enc_b2.append(b2)

    dec_w1z, dec_w1c, dec_b1, dec_w2, dec_b2 = [], [], [], [], []
    for i, vs in enumerate(view_sizes):
        w1, b1, w2, b2 = params["dec"][i]
        dec_w1z.append(w1[:L, :].astype(bf))       # z part
        dec_w1c.append(w1[L:, :].astype(bf))       # condition (labels) part
        dec_b1.append(b1)
        dec_w2.append(w2)
        dec_b2.append(b2)

    wm, bm = params["att_mean"]
    wv, bv = params["att_logvar"]

    return {
        "enc_w1v": tuple(enc_w1v),
        "enc_w1c_all": jnp.concatenate(enc_w1c, axis=1),              # (C, sum_hid) bf16
        "enc_b1_all": jnp.concatenate(enc_b1, axis=1),                # (1, sum_hid) f32
        "enc_w2": tuple(enc_w2),
        "enc_b2": tuple(enc_b2),
        "att_w": jnp.concatenate([wm, wv], axis=1).astype(bf),        # (L, 2L) bf16
        "att_b": jnp.concatenate([bm, bv], axis=1),                   # (1, 2L) f32
        "dec_w1z_all": jnp.concatenate(dec_w1z, axis=1),              # (L, sum_hid) bf16
        "dec_w1c_all": jnp.concatenate(dec_w1c, axis=1),              # (C, sum_hid) bf16
        "dec_b1_all": jnp.concatenate(dec_b1, axis=1),                # (1, sum_hid) f32
        "dec_w2_bd": _block_diag(dec_w2).astype(bf),                  # (sum_hid, sum_vs) bf16
        "dec_b2_all": jnp.concatenate(dec_b2, axis=1),                # (1, sum_vs) f32
    }


# --------------------------------------------------------------------------
# Reference (pure JAX, f32) for sanity check
# --------------------------------------------------------------------------

def reference_forward(views, labels, params, eps):
    latents = []
    for i, v in enumerate(views):
        x = jnp.concatenate([v, labels], axis=1)
        w1, b1, w2, b2 = params["enc"][i]
        h = jnp.maximum(x @ w1 + b1, 0.0)
        latents.append(h @ w2 + b2)
    lat = jnp.stack(latents, axis=1)                # (B, V, L) like torch
    attn = jax.nn.softmax(lat, axis=1)
    combined = jnp.sum(attn * lat, axis=1)
    wm, bm = params["att_mean"]
    wv, bv = params["att_logvar"]
    mu = combined @ wm + bm
    logvar = combined @ wv + bv
    z = mu + eps * jnp.exp(0.5 * logvar)
    decs = []
    for i in range(len(views)):
        xz = jnp.concatenate([z, labels], axis=1)
        w1, b1, w2, b2 = params["dec"][i]
        h = jnp.maximum(xz @ w1 + b1, 0.0)
        decs.append(h @ w2 + b2)
    return decs, mu, logvar


# --------------------------------------------------------------------------
# Main
# --------------------------------------------------------------------------

if __name__ == "__main__":
    key = jax.random.PRNGKey(0)

    # Small shapes consistent with the module's forward.
    batch = 8
    view_sizes = [32, 48, 24]          # 3 views
    condi_size = 16
    hidden_mult = 2.0                  # hyper['hidden_dim_1']
    latent_dim = 16                    # hyper['latent_dim']

    k_params, k_data, k_eps = jax.random.split(key, 3)
    params = init_params(k_params, view_sizes, condi_size, hidden_mult, latent_dim)
    packed = pack_params(params, view_sizes, condi_size, latent_dim)

    data_keys = jax.random.split(k_data, len(view_sizes) + 1)
    views = [jax.random.normal(data_keys[i], (batch, vs), jnp.float32)
             for i, vs in enumerate(view_sizes)]
    labels = jax.random.normal(data_keys[-1], (batch, condi_size), jnp.float32)
    eps = jax.random.normal(k_eps, (batch, latent_dim), jnp.float32)

    forward = make_forward(view_sizes, condi_size, hidden_mult, latent_dim)
    decs, mu, logvar = forward(tuple(views), labels, eps, packed)
    jax.block_until_ready((decs, mu, logvar))

    # sanity check against pure-JAX f32 reference (kernel matmuls are bf16)
    ref_decs, ref_mu, ref_lv = reference_forward(views, labels, params, eps)
    assert jnp.allclose(mu, ref_mu, atol=2e-2, rtol=2e-2), "mu mismatch"
    assert jnp.allclose(logvar, ref_lv, atol=2e-2, rtol=2e-2), "logvar mismatch"
    for d, rd in zip(decs, ref_decs):
        assert jnp.allclose(d, rd, atol=2e-2, rtol=2e-2), "decoder mismatch"

    print("KERNEL_OK")
</pallas_src>

<mosaic_0001>
module attributes {stable_mosaic.version = 11 : i64} {
  func.func @kernel(%arg0: i32, %arg1: memref<8x32xbf16, #tpu.memory_space<vmem>>, %arg2: memref<8x48xbf16, #tpu.memory_space<vmem>>, %arg3: memref<8x24xbf16, #tpu.memory_space<vmem>>, %arg4: memref<8x16xbf16, #tpu.memory_space<vmem>>, %arg5: memref<8x16xf32, #tpu.memory_space<vmem>>, %arg6: memref<32x64xbf16, #tpu.memory_space<vmem>>, %arg7: memref<48x96xbf16, #tpu.memory_space<vmem>>, %arg8: memref<24x48xbf16, #tpu.memory_space<vmem>>, %arg9: memref<16x208xbf16, #tpu.memory_space<vmem>>, %arg10: memref<1x208xf32, #tpu.memory_space<vmem>>, %arg11: memref<64x16xbf16, #tpu.memory_space<vmem>>, %arg12: memref<1x16xf32, #tpu.memory_space<vmem>>, %arg13: memref<96x16xbf16, #tpu.memory_space<vmem>>, %arg14: memref<1x16xf32, #tpu.memory_space<vmem>>, %arg15: memref<48x16xbf16, #tpu.memory_space<vmem>>, %arg16: memref<1x16xf32, #tpu.memory_space<vmem>>, %arg17: memref<16x32xbf16, #tpu.memory_space<vmem>>, %arg18: memref<1x32xf32, #tpu.memory_space<vmem>>, %arg19: memref<16x208xbf16, #tpu.memory_space<vmem>>, %arg20: memref<16x208xbf16, #tpu.memory_space<vmem>>, %arg21: memref<1x208xf32, #tpu.memory_space<vmem>>, %arg22: memref<208x104xbf16, #tpu.memory_space<vmem>>, %arg23: memref<1x104xf32, #tpu.memory_space<vmem>>, %arg24: memref<8x256xf32, #tpu.memory_space<vmem>>) attributes {dimension_semantics = [#tpu.dimension_semantics<arbitrary>], iteration_bounds = array<i64: 1>, scalar_prefetch = 0 : i64, scratch_operands = 0 : i64, tpu.core_type = #tpu.core_type<tc>, window_params = [{pipeline_mode = #tpu.pipeline_mode<synchronous>, transform_indices = @transform_0, window_bounds = array<i64: 8, 32>}, {pipeline_mode = #tpu.pipeline_mode<synchronous>, transform_indices = @transform_1, window_bounds = array<i64: 8, 48>}, {pipeline_mode = #tpu.pipeline_mode<synchronous>, transform_indices = @transform_2, window_bounds = array<i64: 8, 24>}, {pipeline_mode = #tpu.pipeline_mode<synchronous>, transform_indices = @transform_3, window_bounds = array<i64: 8, 16>}, {pipeline_mode = #tpu.pipeline_mode<synchronous>, transform_indices = @transform_4, window_bounds = array<i64: 8, 16>}, {pipeline_mode = #tpu.pipeline_mode<synchronous>, transform_indices = @transform_5, window_bounds = array<i64: 32, 64>}, {pipeline_mode = #tpu.pipeline_mode<synchronous>, transform_indices = @transform_6, window_bounds = array<i64: 48, 96>}, {pipeline_mode = #tpu.pipeline_mode<synchronous>, transform_indices = @transform_7, window_bounds = array<i64: 24, 48>}, {pipeline_mode = #tpu.pipeline_mode<synchronous>, transform_indices = @transform_8, window_bounds = array<i64: 16, 208>}, {pipeline_mode = #tpu.pipeline_mode<synchronous>, transform_indices = @transform_9, window_bounds = array<i64: 1, 208>}, {pipeline_mode = #tpu.pipeline_mode<synchronous>, transform_indices = @transform_10, window_bounds = array<i64: 64, 16>}, {pipeline_mode = #tpu.pipeline_mode<synchronous>, transform_indices = @transform_11, window_bounds = array<i64: 1, 16>}, {pipeline_mode = #tpu.pipeline_mode<synchronous>, transform_indices = @transform_12, window_bounds = array<i64: 96, 16>}, {pipeline_mode = #tpu.pipeline_mode<synchronous>, transform_indices = @transform_13, window_bounds = array<i64: 1, 16>}, {pipeline_mode = #tpu.pipeline_mode<synchronous>, transform_indices = @transform_14, window_bounds = array<i64: 48, 16>}, {pipeline_mode = #tpu.pipeline_mode<synchronous>, transform_indices = @transform_15, window_bounds = array<i64: 1, 16>}, {pipeline_mode = #tpu.pipeline_mode<synchronous>, transform_indices = @transform_16, window_bounds = array<i64: 16, 32>}, {pipeline_mode = #tpu.pipeline_mode<synchronous>, transform_indices = @transform_17, window_bounds = array<i64: 1, 32>}, {pipeline_mode = #tpu.pipeline_mode<synchronous>, transform_indices = @transform_18, window_bounds = array<i64: 16, 208>}, {pipeline_mode = #tpu.pipeline_mode<synchronous>, transform_indices = @transform_19, window_bounds = array<i64: 16, 208>}, {pipeline_mode = #tpu.pipeline_mode<synchronous>, transform_indices = @transform_20, window_bounds = array<i64: 1, 208>}, {pipeline_mode = #tpu.pipeline_mode<synchronous>, transform_indices = @transform_21, window_bounds = array<i64: 208, 104>}, {pipeline_mode = #tpu.pipeline_mode<synchronous>, transform_indices = @transform_22, window_bounds = array<i64: 1, 104>}, {pipeline_mode = #tpu.pipeline_mode<synchronous>, transform_indices = @transform_23, window_bounds = array<i64: 8, 256>}]} {
    %c0 = arith.constant 0 : index
    %c0_0 = arith.constant 0 : index
    %0 = vector.load %arg4[%c0, %c0_0] : memref<8x16xbf16, #tpu.memory_space<vmem>>, vector<8x16xbf16>
    %c0_1 = arith.constant 0 : index
    %c0_2 = arith.constant 0 : index
    %1 = vector.load %arg9[%c0_1, %c0_2] : memref<16x208xbf16, #tpu.memory_space<vmem>>, vector<16x208xbf16>
    %cst = arith.constant dense<0.000000e+00> : vector<8x208xf32>
    %2 = tpu.matmul %0, %1, %cst {dimension_numbers = #tpu.dot_dimension_numbers<[1], [0], [0], [1], [0, 0, 1, 1], [], []>} : vector<8x16xbf16>, vector<16x208xbf16>, vector<8x208xf32> -> vector<8x208xf32>
    %c0_3 = arith.constant 0 : index
    %c0_4 = arith.constant 0 : index
    %3 = vector.load %arg10[%c0_3, %c0_4] : memref<1x208xf32, #tpu.memory_space<vmem>>, vector<1x208xf32>
    %4 = vector.broadcast %3 : vector<1x208xf32> to vector<8x208xf32>
    %5 = arith.addf %2, %4 : vector<8x208xf32>
    %c0_5 = arith.constant 0 : index
    %c0_6 = arith.constant 0 : index
    %6 = vector.load %arg1[%c0_5, %c0_6] : memref<8x32xbf16, #tpu.memory_space<vmem>>, vector<8x32xbf16>
    %c0_7 = arith.constant 0 : index
    %c0_8 = arith.constant 0 : index
    %7 = vector.load %arg6[%c0_7, %c0_8] : memref<32x64xbf16, #tpu.memory_space<vmem>>, vector<32x64xbf16>
    %cst_9 = arith.constant dense<0.000000e+00> : vector<8x64xf32>
    %8 = tpu.matmul %6, %7, %cst_9 {dimension_numbers = #tpu.dot_dimension_numbers<[1], [0], [0], [1], [0, 0, 1, 1], [], []>} : vector<8x32xbf16>, vector<32x64xbf16>, vector<8x64xf32> -> vector<8x64xf32>
    %9 = vector.extract_strided_slice %5 {offsets = [0, 0], sizes = [8, 64], strides = [1, 1]} : vector<8x208xf32> to vector<8x64xf32>
    %10 = arith.addf %8, %9 : vector<8x64xf32>
    %cst_10 = arith.constant 0.000000e+00 : f32
    %11 = vector.broadcast %cst_10 : f32 to vector<8x64xf32>
    %12 = arith.maximumf %10, %11 : vector<8x64xf32>
    %13 = arith.truncf %12 : vector<8x64xf32> to vector<8x64xbf16>
    %c0_11 = arith.constant 0 : index
    %c0_12 = arith.constant 0 : index
    %14 = vector.load %arg11[%c0_11, %c0_12] : memref<64x16xbf16, #tpu.memory_space<vmem>>, vector<64x16xbf16>
    %cst_13 = arith.constant dense<0.000000e+00> : vector<8x16xf32>
    %15 = tpu.matmul %13, %14, %cst_13 {dimension_numbers = #tpu.dot_dimension_numbers<[1], [0], [0], [1], [0, 0, 1, 1], [], []>} : vector<8x64xbf16>, vector<64x16xbf16>, vector<8x16xf32> -> vector<8x16xf32>
    %c0_14 = arith.constant 0 : index
    %c0_15 = arith.constant 0 : index
    %16 = vector.load %arg12[%c0_14, %c0_15] : memref<1x16xf32, #tpu.memory_space<vmem>>, vector<1x16xf32>
    %17 = vector.broadcast %16 : vector<1x16xf32> to vector<8x16xf32>
    %18 = arith.addf %15, %17 : vector<8x16xf32>
    %c0_16 = arith.constant 0 : index
    %c0_17 = arith.constant 0 : index
    %19 = vector.load %arg2[%c0_16, %c0_17] : memref<8x48xbf16, #tpu.memory_space<vmem>>, vector<8x48xbf16>
    %c0_18 = arith.constant 0 : index
    %c0_19 = arith.constant 0 : index
    %20 = vector.load %arg7[%c0_18, %c0_19] : memref<48x96xbf16, #tpu.memory_space<vmem>>, vector<48x96xbf16>
    %cst_20 = arith.constant dense<0.000000e+00> : vector<8x96xf32>
    %21 = tpu.matmul %19, %20, %cst_20 {dimension_numbers = #tpu.dot_dimension_numbers<[1], [0], [0], [1], [0, 0, 1, 1], [], []>} : vector<8x48xbf16>, vector<48x96xbf16>, vector<8x96xf32> -> vector<8x96xf32>
    %22 = vector.extract_strided_slice %5 {offsets = [0, 64], sizes = [8, 96], strides = [1, 1]} : vector<8x208xf32> to vector<8x96xf32>
    %23 = arith.addf %21, %22 : vector<8x96xf32>
    %cst_21 = arith.constant 0.000000e+00 : f32
    %24 = vector.broadcast %cst_21 : f32 to vector<8x96xf32>
    %25 = arith.maximumf %23, %24 : vector<8x96xf32>
    %26 = arith.truncf %25 : vector<8x96xf32> to vector<8x96xbf16>
    %c0_22 = arith.constant 0 : index
    %c0_23 = arith.constant 0 : index
    %27 = vector.load %arg13[%c0_22, %c0_23] : memref<96x16xbf16, #tpu.memory_space<vmem>>, vector<96x16xbf16>
    %cst_24 = arith.constant dense<0.000000e+00> : vector<8x16xf32>
    %28 = tpu.matmul %26, %27, %cst_24 {dimension_numbers = #tpu.dot_dimension_numbers<[1], [0], [0], [1], [0, 0, 1, 1], [], []>} : vector<8x96xbf16>, vector<96x16xbf16>, vector<8x16xf32> -> vector<8x16xf32>
    %c0_25 = arith.constant 0 : index
    %c0_26 = arith.constant 0 : index
    %29 = vector.load %arg14[%c0_25, %c0_26] : memref<1x16xf32, #tpu.memory_space<vmem>>, vector<1x16xf32>
    %30 = vector.broadcast %29 : vector<1x16xf32> to vector<8x16xf32>
    %31 = arith.addf %28, %30 : vector<8x16xf32>
    %c0_27 = arith.constant 0 : index
    %c0_28 = arith.constant 0 : index
    %32 = vector.load %arg3[%c0_27, %c0_28] : memref<8x24xbf16, #tpu.memory_space<vmem>>, vector<8x24xbf16>
    %c0_29 = arith.constant 0 : index
    %c0_30 = arith.constant 0 : index
    %33 = vector.load %arg8[%c0_29, %c0_30] : memref<24x48xbf16, #tpu.memory_space<vmem>>, vector<24x48xbf16>
    %cst_31 = arith.constant dense<0.000000e+00> : vector<8x48xf32>
    %34 = tpu.matmul %32, %33, %cst_31 {dimension_numbers = #tpu.dot_dimension_numbers<[1], [0], [0], [1], [0, 0, 1, 1], [], []>} : vector<8x24xbf16>, vector<24x48xbf16>, vector<8x48xf32> -> vector<8x48xf32>
    %35 = vector.extract_strided_slice %5 {offsets = [0, 160], sizes = [8, 48], strides = [1, 1]} : vector<8x208xf32> to vector<8x48xf32>
    %36 = arith.addf %34, %35 : vector<8x48xf32>
    %cst_32 = arith.constant 0.000000e+00 : f32
    %37 = vector.broadcast %cst_32 : f32 to vector<8x48xf32>
    %38 = arith.maximumf %36, %37 : vector<8x48xf32>
    %39 = arith.truncf %38 : vector<8x48xf32> to vector<8x48xbf16>
    %c0_33 = arith.constant 0 : index
    %c0_34 = arith.constant 0 : index
    %40 = vector.load %arg15[%c0_33, %c0_34] : memref<48x16xbf16, #tpu.memory_space<vmem>>, vector<48x16xbf16>
    %cst_35 = arith.constant dense<0.000000e+00> : vector<8x16xf32>
    %41 = tpu.matmul %39, %40, %cst_35 {dimension_numbers = #tpu.dot_dimension_numbers<[1], [0], [0], [1], [0, 0, 1, 1], [], []>} : vector<8x48xbf16>, vector<48x16xbf16>, vector<8x16xf32> -> vector<8x16xf32>
    %c0_36 = arith.constant 0 : index
    %c0_37 = arith.constant 0 : index
    %42 = vector.load %arg16[%c0_36, %c0_37] : memref<1x16xf32, #tpu.memory_space<vmem>>, vector<1x16xf32>
    %43 = vector.broadcast %42 : vector<1x16xf32> to vector<8x16xf32>
    %44 = arith.addf %41, %43 : vector<8x16xf32>
    %45 = arith.maximumf %18, %31 : vector<8x16xf32>
    %46 = arith.maximumf %45, %44 : vector<8x16xf32>
    %47 = arith.subf %18, %46 : vector<8x16xf32>
    %48 = math.exp %47 : vector<8x16xf32>
    %49 = arith.subf %31, %46 : vector<8x16xf32>
    %50 = math.exp %49 : vector<8x16xf32>
    %51 = arith.subf %44, %46 : vector<8x16xf32>
    %52 = math.exp %51 : vector<8x16xf32>
    %53 = arith.mulf %48, %18 : vector<8x16xf32>
    %54 = arith.addf %48, %50 : vector<8x16xf32>
    %55 = arith.mulf %50, %31 : vector<8x16xf32>
    %56 = arith.addf %53, %55 : vector<8x16xf32>
    %57 = arith.addf %54, %52 : vector<8x16xf32>
    %58 = arith.mulf %52, %44 : vector<8x16xf32>
    %59 = arith.addf %56, %58 : vector<8x16xf32>
    %60 = arith.divf %59, %57 : vector<8x16xf32>
    %61 = arith.truncf %60 : vector<8x16xf32> to vector<8x16xbf16>
    %c0_38 = arith.constant 0 : index
    %c0_39 = arith.constant 0 : index
    %62 = vector.load %arg17[%c0_38, %c0_39] : memref<16x32xbf16, #tpu.memory_space<vmem>>, vector<16x32xbf16>
    %cst_40 = arith.constant dense<0.000000e+00> : vector<8x32xf32>
    %63 = tpu.matmul %61, %62, %cst_40 {dimension_numbers = #tpu.dot_dimension_numbers<[1], [0], [0], [1], [0, 0, 1, 1], [], []>} : vector<8x16xbf16>, vector<16x32xbf16>, vector<8x32xf32> -> vector<8x32xf32>
    %c0_41 = arith.constant 0 : index
    %c0_42 = arith.constant 0 : index
    %64 = vector.load %arg18[%c0_41, %c0_42] : memref<1x32xf32, #tpu.memory_space<vmem>>, vector<1x32xf32>
    %65 = vector.broadcast %64 : vector<1x32xf32> to vector<8x32xf32>
    %66 = arith.addf %63, %65 : vector<8x32xf32>
    %67 = vector.extract_strided_slice %66 {offsets = [0, 0], sizes = [8, 16], strides = [1, 1]} : vector<8x32xf32> to vector<8x16xf32>
    %68 = vector.extract_strided_slice %66 {offsets = [0, 16], sizes = [8, 16], strides = [1, 1]} : vector<8x32xf32> to vector<8x16xf32>
    %c0_43 = arith.constant 0 : index
    %c0_44 = arith.constant 0 : index
    %69 = vector.load %arg5[%c0_43, %c0_44] : memref<8x16xf32, #tpu.memory_space<vmem>>, vector<8x16xf32>
    %cst_45 = arith.constant 5.000000e-01 : f32
    %70 = vector.broadcast %cst_45 : f32 to vector<8x16xf32>
    %71 = arith.mulf %70, %68 : vector<8x16xf32>
    %72 = math.exp %71 : vector<8x16xf32>
    %73 = arith.mulf %69, %72 : vector<8x16xf32>
    %74 = arith.addf %67, %73 : vector<8x16xf32>
    %75 = arith.truncf %74 : vector<8x16xf32> to vector<8x16xbf16>
    %c0_46 = arith.constant 0 : index
    %c0_47 = arith.constant 0 : index
    %76 = vector.load %arg19[%c0_46, %c0_47] : memref<16x208xbf16, #tpu.memory_space<vmem>>, vector<16x208xbf16>
    %cst_48 = arith.constant dense<0.000000e+00> : vector<8x208xf32>
    %77 = tpu.matmul %75, %76, %cst_48 {dimension_numbers = #tpu.dot_dimension_numbers<[1], [0], [0], [1], [0, 0, 1, 1], [], []>} : vector<8x16xbf16>, vector<16x208xbf16>, vector<8x208xf32> -> vector<8x208xf32>
    %c0_49 = arith.constant 0 : index
    %c0_50 = arith.constant 0 : index
    %78 = vector.load %arg20[%c0_49, %c0_50] : memref<16x208xbf16, #tpu.memory_space<vmem>>, vector<16x208xbf16>
    %cst_51 = arith.constant dense<0.000000e+00> : vector<8x208xf32>
    %79 = tpu.matmul %0, %78, %cst_51 {dimension_numbers = #tpu.dot_dimension_numbers<[1], [0], [0], [1], [0, 0, 1, 1], [], []>} : vector<8x16xbf16>, vector<16x208xbf16>, vector<8x208xf32> -> vector<8x208xf32>
    %80 = arith.addf %77, %79 : vector<8x208xf32>
    %c0_52 = arith.constant 0 : index
    %c0_53 = arith.constant 0 : index
    %81 = vector.load %arg21[%c0_52, %c0_53] : memref<1x208xf32, #tpu.memory_space<vmem>>, vector<1x208xf32>
    %82 = vector.broadcast %81 : vector<1x208xf32> to vector<8x208xf32>
    %83 = arith.addf %80, %82 : vector<8x208xf32>
    %cst_54 = arith.constant 0.000000e+00 : f32
    %84 = vector.broadcast %cst_54 : f32 to vector<8x208xf32>
    %85 = arith.maximumf %83, %84 : vector<8x208xf32>
    %86 = arith.truncf %85 : vector<8x208xf32> to vector<8x208xbf16>
    %c0_55 = arith.constant 0 : index
    %c0_56 = arith.constant 0 : index
    %87 = vector.load %arg22[%c0_55, %c0_56] : memref<208x104xbf16, #tpu.memory_space<vmem>>, vector<208x104xbf16>
    %cst_57 = arith.constant dense<0.000000e+00> : vector<8x104xf32>
    %88 = tpu.matmul %86, %87, %cst_57 {dimension_numbers = #tpu.dot_dimension_numbers<[1], [0], [0], [1], [0, 0, 1, 1], [], []>} : vector<8x208xbf16>, vector<208x104xbf16>, vector<8x104xf32> -> vector<8x104xf32>
    %c0_58 = arith.constant 0 : index
    %c0_59 = arith.constant 0 : index
    %89 = vector.load %arg23[%c0_58, %c0_59] : memref<1x104xf32, #tpu.memory_space<vmem>>, vector<1x104xf32>
    %90 = vector.broadcast %89 : vector<1x104xf32> to vector<8x104xf32>
    %91 = arith.addf %88, %90 : vector<8x104xf32>
    %cst_60 = arith.constant 0.000000e+00 : f32
    %92 = vector.broadcast %cst_60 : f32 to vector<8x256xf32>
    %c0_61 = arith.constant 0 : index
    %c0_62 = arith.constant 0 : index
    %93 = vector.load %arg24[%c0_61, %c0_62] : memref<8x256xf32, #tpu.memory_space<vmem>>, vector<8x256xf32>
    tpu.vector_store %arg24[%c0_61, %c0_62], %92 {strides = array<i32>} : memref<8x256xf32, #tpu.memory_space<vmem>>, vector<8x256xf32>,
    %c0_63 = arith.constant 0 : index
    %c0_64 = arith.constant 0 : index
    %94 = vector.load %arg24[%c0_63, %c0_64] : memref<8x256xf32, #tpu.memory_space<vmem>>, vector<8x104xf32>
    tpu.vector_store %arg24[%c0_63, %c0_64], %91 {strides = array<i32>} : memref<8x256xf32, #tpu.memory_space<vmem>>, vector<8x104xf32>,
    %c0_65 = arith.constant 0 : index
    %c128 = arith.constant 128 : index
    %95 = vector.load %arg24[%c0_65, %c128] : memref<8x256xf32, #tpu.memory_space<vmem>>, vector<8x32xf32>
    tpu.vector_store %arg24[%c0_65, %c128], %66 {strides = array<i32>} : memref<8x256xf32, #tpu.memory_space<vmem>>, vector<8x32xf32>,
    return
  }
  func.func @transform_0(%arg0: i32) -> (i32, i32) {
    %c0_i32 = arith.constant 0 : i32
    %c0_i32_0 = arith.constant 0 : i32
    %c0_i32_1 = arith.constant 0 : i32
    return %c0_i32, %c0_i32_0 : i32, i32
  }
  func.func @transform_1(%arg0: i32) -> (i32, i32) {
    %c0_i32 = arith.constant 0 : i32
    %c0_i32_0 = arith.constant 0 : i32
    %c0_i32_1 = arith.constant 0 : i32
    return %c0_i32, %c0_i32_0 : i32, i32
  }
  func.func @transform_2(%arg0: i32) -> (i32, i32) {
    %c0_i32 = arith.constant 0 : i32
    %c0_i32_0 = arith.constant 0 : i32
    %c0_i32_1 = arith.constant 0 : i32
    return %c0_i32, %c0_i32_0 : i32, i32
  }
  func.func @transform_3(%arg0: i32) -> (i32, i32) {
    %c0_i32 = arith.constant 0 : i32
    %c0_i32_0 = arith.constant 0 : i32
    %c0_i32_1 = arith.constant 0 : i32
    return %c0_i32, %c0_i32_0 : i32, i32
  }
  func.func @transform_4(%arg0: i32) -> (i32, i32) {
    %c0_i32 = arith.constant 0 : i32
    %c0_i32_0 = arith.constant 0 : i32
    %c0_i32_1 = arith.constant 0 : i32
    return %c0_i32, %c0_i32_0 : i32, i32
  }
  func.func @transform_5(%arg0: i32) -> (i32, i32) {
    %c0_i32 = arith.constant 0 : i32
    %c0_i32_0 = arith.constant 0 : i32
    %c0_i32_1 = arith.constant 0 : i32
    return %c0_i32, %c0_i32_0 : i32, i32
  }
  func.func @transform_6(%arg0: i32) -> (i32, i32) {
    %c0_i32 = arith.constant 0 : i32
    %c0_i32_0 = arith.constant 0 : i32
    %c0_i32_1 = arith.constant 0 : i32
    return %c0_i32, %c0_i32_0 : i32, i32
  }
  func.func @transform_7(%arg0: i32) -> (i32, i32) {
    %c0_i32 = arith.constant 0 : i32
    %c0_i32_0 = arith.constant 0 : i32
    %c0_i32_1 = arith.constant 0 : i32
    return %c0_i32, %c0_i32_0 : i32, i32
  }
  func.func @transform_8(%arg0: i32) -> (i32, i32) {
    %c0_i32 = arith.constant 0 : i32
    %c0_i32_0 = arith.constant 0 : i32
    %c0_i32_1 = arith.constant 0 : i32
    return %c0_i32, %c0_i32_0 : i32, i32
  }
  func.func @transform_9(%arg0: i32) -> (i32, i32) {
    %c0_i32 = arith.constant 0 : i32
    %c0_i32_0 = arith.constant 0 : i32
    %c0_i32_1 = arith.constant 0 : i32
    return %c0_i32, %c0_i32_0 : i32, i32
  }
  func.func @transform_10(%arg0: i32) -> (i32, i32) {
    %c0_i32 = arith.constant 0 : i32
    %c0_i32_0 = arith.constant 0 : i32
    %c0_i32_1 = arith.constant 0 : i32
    return %c0_i32, %c0_i32_0 : i32, i32
  }
  func.func @transform_11(%arg0: i32) -> (i32, i32) {
    %c0_i32 = arith.constant 0 : i32
    %c0_i32_0 = arith.constant 0 : i32
    %c0_i32_1 = arith.constant 0 : i32
    return %c0_i32, %c0_i32_0 : i32, i32
  }
  func.func @transform_12(%arg0: i32) -> (i32, i32) {
    %c0_i32 = arith.constant 0 : i32
    %c0_i32_0 = arith.constant 0 : i32
    %c0_i32_1 = arith.constant 0 : i32
    return %c0_i32, %c0_i32_0 : i32, i32
  }
  func.func @transform_13(%arg0: i32) -> (i32, i32) {
    %c0_i32 = arith.constant 0 : i32
    %c0_i32_0 = arith.constant 0 : i32
    %c0_i32_1 = arith.constant 0 : i32
    return %c0_i32, %c0_i32_0 : i32, i32
  }
  func.func @transform_14(%arg0: i32) -> (i32, i32) {
    %c0_i32 = arith.constant 0 : i32
    %c0_i32_0 = arith.constant 0 : i32
    %c0_i32_1 = arith.constant 0 : i32
    return %c0_i32, %c0_i32_0 : i32, i32
  }
  func.func @transform_15(%arg0: i32) -> (i32, i32) {
    %c0_i32 = arith.constant 0 : i32
    %c0_i32_0 = arith.constant 0 : i32
    %c0_i32_1 = arith.constant 0 : i32
    return %c0_i32, %c0_i32_0 : i32, i32
  }
  func.func @transform_16(%arg0: i32) -> (i32, i32) {
    %c0_i32 = arith.constant 0 : i32
    %c0_i32_0 = arith.constant 0 : i32
    %c0_i32_1 = arith.constant 0 : i32
    return %c0_i32, %c0_i32_0 : i32, i32
  }
  func.func @transform_17(%arg0: i32) -> (i32, i32) {
    %c0_i32 = arith.constant 0 : i32
    %c0_i32_0 = arith.constant 0 : i32
    %c0_i32_1 = arith.constant 0 : i32
    return %c0_i32, %c0_i32_0 : i32, i32
  }
  func.func @transform_18(%arg0: i32) -> (i32, i32) {
    %c0_i32 = arith.constant 0 : i32
    %c0_i32_0 = arith.constant 0 : i32
    %c0_i32_1 = arith.constant 0 : i32
    return %c0_i32, %c0_i32_0 : i32, i32
  }
  func.func @transform_19(%arg0: i32) -> (i32, i32) {
    %c0_i32 = arith.constant 0 : i32
    %c0_i32_0 = arith.constant 0 : i32
    %c0_i32_1 = arith.constant 0 : i32
    return %c0_i32, %c0_i32_0 : i32, i32
  }
  func.func @transform_20(%arg0: i32) -> (i32, i32) {
    %c0_i32 = arith.constant 0 : i32
    %c0_i32_0 = arith.constant 0 : i32
    %c0_i32_1 = arith.constant 0 : i32
    return %c0_i32, %c0_i32_0 : i32, i32
  }
  func.func @transform_21(%arg0: i32) -> (i32, i32) {
    %c0_i32 = arith.constant 0 : i32
    %c0_i32_0 = arith.constant 0 : i32
    %c0_i32_1 = arith.constant 0 : i32
    return %c0_i32, %c0_i32_0 : i32, i32
  }
  func.func @transform_22(%arg0: i32) -> (i32, i32) {
    %c0_i32 = arith.constant 0 : i32
    %c0_i32_0 = arith.constant 0 : i32
    %c0_i32_1 = arith.constant 0 : i32
    return %c0_i32, %c0_i32_0 : i32, i32
  }
  func.func @transform_23(%arg0: i32) -> (i32, i32) {
    %c0_i32 = arith.constant 0 : i32
    %c0_i32_0 = arith.constant 0 : i32
    %c0_i32_1 = arith.constant 0 : i32
    return %c0_i32, %c0_i32_0 : i32, i32
  }
}

</mosaic_0001>

<bundles_post_ra>
// kernel: forward.1
= control target key start
LH: loop header
LB: loop body
LE: loop exit
PB: predicated region body
PF: predicated region fallthrough
CT: control target
= control target key end

     0   :  { %s1300_s0 = inlined_call_operand.vmem [shape: bf16[8,32], index: 0, kind: input, shape index: {}]   ;;  %s1301_s1 = inlined_call_operand.vmem [shape: bf16[8,48], index: 1, kind: input, shape index: {}]   ;;  %s1302_s2 = inlined_call_operand.vmem [shape: bf16[8,24], index: 2, kind: input, shape index: {}]   ;;  %s1303_s3 = inlined_call_operand.vmem [shape: bf16[8,16], index: 3, kind: input, shape index: {}]   ;;  %s1304_s4 = inlined_call_operand.vmem [shape: f32[8,16], index: 4, kind: input, shape index: {}]   ;;  %s1305_s5 = inlined_call_operand.vmem [shape: bf16[32,64], index: 5, kind: input, shape index: {}]   ;;  %s1306_s6 = inlined_call_operand.vmem [shape: bf16[48,96], index: 6, kind: input, shape index: {}]   ;;  %s1307_s7 = inlined_call_operand.vmem [shape: bf16[24,48], index: 7, kind: input, shape index: {}]   ;;  %s1308_s8 = inlined_call_operand.vmem [shape: bf16[16,208], index: 8, kind: input, shape index: {}]   ;;  %s1309_s9 = inlined_call_operand.vmem [shape: f32[1,208], index: 9, kind: input, shape index: {}]   ;;  %s1310_s10 = inlined_call_operand.vmem [shape: bf16[64,16], index: 10, kind: input, shape index: {}]   ;;  %s1311_s11 = inlined_call_operand.vmem [shape: f32[1,16], index: 11, kind: input, shape index: {}]   ;;  %s1312_s12 = inlined_call_operand.vmem [shape: bf16[96,16], index: 12, kind: input, shape index: {}]   ;;  %s1313_s13 = inlined_call_operand.vmem [shape: f32[1,16], index: 13, kind: input, shape index: {}]   ;;  %s1314_s14 = inlined_call_operand.vmem [shape: bf16[48,16], index: 14, kind: input, shape index: {}]   ;;  %s1315_s15 = inlined_call_operand.vmem [shape: f32[1,16], index: 15, kind: input, shape index: {}]   ;;  %s1316_s16 = inlined_call_operand.vmem [shape: bf16[16,32], index: 16, kind: input, shape index: {}]   ;;  %s1317_s17 = inlined_call_operand.vmem [shape: f32[1,32], index: 17, kind: input, shape index: {}]   ;;  %s1318_s18 = inlined_call_operand.vmem [shape: bf16[16,208], index: 18, kind: input, shape index: {}]   ;;  %s1319_s19 = inlined_call_operand.vmem [shape: bf16[16,208], index: 19, kind: input, shape index: {}]   ;;  %s1320_s20 = inlined_call_operand.vmem [shape: f32[1,208], index: 20, kind: input, shape index: {}]   ;;  %s1321_s21 = inlined_call_operand.hbm [shape: bf16[208,104], index: 21, kind: input, shape index: {}]   ;;  %s1322_s22 = inlined_call_operand.vmem [shape: f32[1,104], index: 22, kind: input, shape index: {}]   ;;  %s1323_s23 = inlined_call_operand.vmem [shape: f32[8,256], index: 23, kind: output, shape index: {}]  }
   0x1   :  { %1327 = sst [smem:[#allocation5_spill]] %s1300_s0 }
   0x2   :  { %1328 = sst [smem:[#allocation6_spill]] %s1301_s1 }
   0x3   :  { %1329 = sst [smem:[#allocation7_spill]] %s1302_s2 }
   0x4   :  { %1330 = sst [smem:[#allocation8_spill]] %s1303_s3 }
   0x5   :  { %1331 = sst [smem:[#allocation9_spill]] %s1304_s4 }
   0x6   :  { %1332 = sst [smem:[#allocation10_spill]] %s1305_s5 }
   0x7   :  { %1333 = sst [smem:[#allocation11_spill]] %s1306_s6 }
   0x8   :  { %1334 = sst [smem:[#allocation12_spill]] %s1307_s7 }
   0x9   :  { %28 = vsyncpa [#allocation3], 0  ;;  %s75_s24 = sshll.u32 %s1321_s21, 4  ;;  %s1001_s25 = smov [#allocation2]   ;;  %s76_s24 = int_to_ptr.hbm [resolvable:$true] %s75_s24 }
   0xa   :  { %s77_s5 = sshll.u32 %s1001_s25, 4  ;;  %s1002_s1 = smov 64   ;;  %s78_s5 = int_to_ptr.vmem [resolvable:$true] %s77_s5 }
   0xb   :  { %s1003_s26 = smov 4  }
   0xc   :  { %83 = dma.hbm_to_vmem [thread:$0]  %s76_s24, 1664, %s78_s5, [#allocation3], %s1002_s1, %s1002_s1, %s1003_s26  }
   0xd   :  { %999 = dma.done.wait [#allocation3], 1664  }
   0xe   :  { %1000 = vsyncadd [#allocation3], 4294965632  ;;  %v747_v0 = vld [vmem:[%s1308_s8] sm:$0xf]  ;;  %v916_v1 = vld [vmem:[%s1308_s8 + $0x4] sm:$0xf0] }
   0xf   :  { %v915_v2 = vld [vmem:[%s1308_s8 + $0x4] sm:$0xf]  ;;  %v748_v3 = vor.u32 %v916_v1, %v747_v0  ;;  %v749_v4 = vld [vmem:[%s1308_s8 + $0x8] sm:$0xf0]  ;;  %s1335_s30 = sld [smem:[#allocation10_spill]]  ;;  %vm110_vm0 = vcmask 130048  }
  0x10   :  { %v752_v6 = vor.u32 %v915_v2, %v749_v4  ;;  %s1336_s5 = sld [smem:[#allocation12_spill]]  ;;  %vm370_vm1 = vcmask 1043456   ;;  %vm157_vm2 = vcmask 261120   ;;  %vm366_vm3 = vcmask 195584   ;;  %v922_v20 = vld [vmem:[%s1310_s10 + $0x18] sm:$0xff]  ;;  %v921_v21 = vld [vmem:[%s1310_s10 + $0x10] sm:$0xff] }
  0x11   :  { %121 = vmatpush.bf16.msra.mxu0 %v748_v3  ;;  %s1337_s6 = sld [smem:[#allocation8_spill]]  ;;  %vm262_vm4 = vcmask 392192   ;;  %v920_v22 = vld [vmem:[%s1310_s10 + $0x8] sm:$0xff]  ;;  %v919_v23 = vld [vmem:[%s1310_s10] sm:$0xff]  ;;  %v935_v25 = vld [vmem:[%s1314_s14 + $0x10] sm:$0xff]  ;;  %s1004_s3 = smov 96  }
  0x12   :  { %s1338_s28 = sld [smem:[#allocation11_spill]]  ;;  %134 = vmatpush.bf16.msra.mxu1 %v752_v6  ;;  %v931_v24 = vld [vmem:[%s1312_s12 + $0x28] sm:$0xff]  ;;  %v930_v26 = vld [vmem:[%s1312_s12 + $0x20] sm:$0xff]  ;;  %vm212_vm5 = vcmask 523264   ;;  %v929_v44 = vld [vmem:[%s1312_s12 + $0x18] sm:$0xff]  ;;  %vm333_vm6 = vcmask 785408  }
  0x13   :  { %s1340_s7 = sld [smem:[#allocation7_spill]]  ;;  %v934_v27 = vld [vmem:[%s1314_s14 + $0x8] sm:$0xff]  ;;  %v94_v28 = vld [vmem:[%s1309_s9] sm:$0x3]  ;;  %v928_v47 = vld [vmem:[%s1312_s12 + $0x10] sm:$0xff]  ;;  %s1006_s2 = smov 112  }
  0x14   :  { %s1341_s29 = sld [smem:[#allocation6_spill]]  ;;  %v97_v29 = vperm.slane %v94_v28, 1  ;;  %v96_v33 = vperm.slane %v94_v28, 0  ;;  %v933_v46 = vld [vmem:[%s1314_s14] sm:$0xff]  ;;  %v927_v48 = vld [vmem:[%s1312_s12 + $0x8] sm:$0xff]  ;;  %vm705_vm11 = vcmask 654336  }
  0x15   :  { %v918_v5 = vld [vmem:[%s1335_s30 + $0x8] sm:$0xff]  ;;  %v917_v9 = vld [vmem:[%s1335_s30] sm:$0xff]  ;;  %s1339_s30 = sld [smem:[#allocation5_spill]]  ;;  %vm737_vm12 = vcmask 850944  }
  0x16   :  { %v353_v7 = vld [vmem:[%s1336_s5 + $0x8] sm:$0xf]  ;;  %167 = vmatpush.bf16.msra.mxu3 %v918_v5  ;;  %v932_v16 = vld [vmem:[%s1336_s5] sm:$0xff]  ;;  %339 = vmatpush.bf16.msrb.mxu1 %v931_v24  ;;  %s1342_s21 = sld [smem:[#allocation9_spill]] }
  0x17   :  { %v1153_v8 = vld [vmem:[%s1337_s6] sm:$0xf]  ;;  %v359_v10 = vunpack.c.l.b16 %v353_v7 }
  0x18   :  { %v925_v11 = vld [vmem:[%s1338_s28 + $0x10] sm:$0xff]  ;;  %v924_v13 = vld [vmem:[%s1338_s28 + $0x8] sm:$0xff]  ;;  %753 = vmatmul.msk.bf16.vlgmr.msra.gmra.mxu0 %vm110_vm0, %v1153_v8  ;;  %754 = vmatmul.msk.bf16.vlgmr.msra.gmra.mxu1 %vm110_vm0, %v1153_v8  ;;  %v923_v17 = vld [vmem:[%s1338_s28] sm:$0xff] }
  0x19   :  { %v361_v12 = vpack.c.b16 %v359_v10, %v359_v10  ;;  %271 = vmatpush.bf16.msrb.mxu0 %v925_v11  ;;  %v350_v18 = vld [vmem:[%s1340_s7] sm:$0xf] }
  0x1a   :  { %168 = vmatpush.bf16.msra.mxu3 %v917_v9  ;;  %v229_v19 = vld [vmem:[%s1341_s29] sm:$0xf]  ;;  %340 = vmatpush.bf16.msrb.mxu1 %v930_v26 }
  0x1b   :  { %v140_v14 = vld [vmem:[%s1339_s30] sm:$0xf]  ;;  %v372_v15 = vsel %vm370_vm1, %v361_v12, 0 }
  0x1c   :  { %380 = vmatpush.bf16.msra.mxu2 %v372_v15  ;;  %v926_v50 = vld [vmem:[%s1312_s12] sm:$0xff] }
  0x1d   :  { %272 = vmatpush.bf16.msrb.mxu0 %v924_v13  ;;  %763 = vmatmul.msk.bf16.vlgmr.msra.gmra.mxu3 %vm157_vm2, %v140_v14  ;;  %v960_v63 = vld [vmem:[%s1311_s11] ss:$0 sm:$0xff] }
  0x1e   :  { %220 = vmatpush.bf16.msrb.mxu3 %v922_v20  ;;  %341 = vmatpush.bf16.msrb.mxu1 %v929_v44  ;;  %v962_v1 = vld [vmem:[%s1313_s13] ss:$0 sm:$0xff] }
  0x1f   :  { %v961_v2 = vld [vmem:[%s1315_s15] ss:$0 sm:$0xff] }
  0x20   :  { %381 = vmatpush.bf16.msra.mxu2 %v932_v16  ;;  %v936_v15 = vld [vmem:[%s1316_s16] sm:$0xff] }
  0x21   :  { %273 = vmatpush.bf16.msrb.mxu0 %v923_v17  ;;  %v854_v44 = vld [vmem:[%s1318_s18] sm:$0xf] }
  0x22   :  { %221 = vmatpush.bf16.msrb.mxu3 %v921_v21  ;;  %342 = vmatpush.bf16.msrb.mxu1 %v928_v47 }
  0x23   :  { %823 = vmatmul.msk.bf16.vlgmr.msra.gmra.mxu2 %vm366_vm3, %v350_v18 }
  0x25   :  { %489 = vmatpush.bf16.msra.mxu0 %v936_v15  ;;  %v949_v15 = vld [vmem:[#allocation2 + $0x40] sm:$0xff] }
  0x26   :  { %222 = vmatpush.bf16.msrb.mxu3 %v920_v22  ;;  %343 = vmatpush.bf16.msrb.mxu1 %v927_v48  ;;  %v963_v48 = vld [vmem:[%s1317_s17] ss:$0 sm:$0xff] }
  0x28   :  { %793 = vmatmul.msk.bf16.vlgmr.msrb.gmra.mxu0 %vm262_vm4, %v229_v19 }
  0x2a   :  { %223 = vmatpush.bf16.msrb.mxu3 %v919_v23  ;;  %344 = vmatpush.bf16.msrb.mxu1 %v926_v50 }
  0x2e   :  { %425 = vmatpush.bf16.msra.mxu3 %v935_v25 }
  0x32   :  { %426 = vmatpush.bf16.msra.mxu3 %v934_v27 }
  0x36   :  { %427 = vmatpush.bf16.msra.mxu3 %v933_v46  ;;  %v938_v46 = vld [vmem:[%s1318_s18 + $0x4] sm:$0xf0] }
  0x37   :  { %v855_v47 = vor.u32 %v938_v46, %v854_v44 }
  0x95   :  { %v123_v30 = vpop.f32.mrf.mxu0  ;;  %v136_v31 = vpop.f32.mrf.mxu1 }
  0x96   :  { %v137_v32 = vadd.f32 %v136_v31, %v97_v29  ;;  %v124_v34 = vadd.f32 %v123_v30, %v96_v33 }
  0x98   :  { %258 = vrot.lane.b32.xlu1 %v137_v32, %s1002_s1  ;;  %363 = vrot.lane.b32.xlu0 %v137_v32, %s1004_s3 }
  0x9d   :  { %v125_v35 = vpop.f32.mrf.mxu0  ;;  %v138_v36 = vpop.f32.mrf.mxu1 }
  0xa0   :  { %v170_v37 = vpop.f32.mrf.mxu3  ;;  %256 = vrot.lane.b32.xlu0 %v124_v34, %s1002_s1 }
  0xa1   :  { %v171_v38 = vadd.f32 %v170_v37, %v124_v34 }
  0xa3   :  { %v174_v39 = vmax.f32 %v171_v38, 0.0 }
  0xa5   :  { %v175_v40 = vpack.c.bf16 %v174_v39, %v174_v39  ;;  %v275_v45 = vpop.f32.mrf.mxu0 }
  0xa6   :  { %v383_v41 = vpop.f32.mrf.mxu2 }
  0xa7   :  { %780 = vmatmul.msk.bf16.vlgmr.msrb.gmra.mxu3 %vm212_vm5, %v175_v40 }
  0xa8   :  { %v172_v42 = vpop.f32.mrf.mxu3  ;;  %566 = vmatpush.bf16.msrb.mxu3 %v855_v47 }
  0xa9   :  { %v844_v42 = vld [vmem:[%s1319_s19] sm:$0xf] }
  0xad   :  { %v277_v49 = vpop.f32.mrf.mxu0 }
  0xae   :  { %v385_v43 = vpop.f32.mrf.mxu2 }
  0xaf   :  { %v940_v43 = vld [vmem:[%s1319_s19 + $0x4] sm:$0xf0] }
 0x10a   :  { %v364_v51 = vpop.permute.xlu0 %363  ;;  %v259_v55 = vpop.permute.xlu1 %258 }
 0x10b   :  { %v384_v52 = vadd.f32 %v383_v41, %v364_v51  ;;  %v1005_v41 = vmov 0.0  }
 0x10c   :  { %736 = vst [vmem:[%s1323_s23 + $0x8] sm:$0xff] %v1005_v41 }
 0x10d   :  { %v387_v53 = vmax.f32 %v384_v52, 0.0  ;;  %735 = vst [vmem:[%s1323_s23] sm:$0xff] %v1005_v41 }
 0x10f   :  { %v388_v54 = vpack.c.bf16 %v387_v53, %v387_v53 }
 0x111   :  { %836 = vmatmul.msk.bf16.vlgmr.msra.gmra.mxu3 %vm262_vm4, %v388_v54 }
 0x112   :  { %v257_v56 = vpop.permute.xlu0 %256 }
 0x113   :  { %v260_v57 = vsel %vm212_vm5, %v257_v56, %v259_v55  ;;  %v939_v55 = vld [vmem:[%s1319_s19 + $0x4] sm:$0xf]  ;;  %v846_v56 = vld [vmem:[%s1319_s19 + $0x8] sm:$0xf0] }
 0x114   :  { %v276_v58 = vadd.f32 %v275_v45, %v260_v57  ;;  %v845_v45 = vor.u32 %v940_v43, %v844_v42  ;;  %v937_v57 = vld [vmem:[%s1318_s18 + $0x4] sm:$0xf] }
 0x116   :  { %v279_v59 = vmax.f32 %v276_v58, 0.0  ;;  %527 = vmatpush.bf16.msrb.mxu2 %v845_v45  ;;  %v849_v58 = vor.u32 %v939_v55, %v846_v56 }
 0x118   :  { %v280_v60 = vpack.c.bf16 %v279_v59, %v279_v59  ;;  %v856_v59 = vld [vmem:[%s1318_s18 + $0x8] sm:$0xf0]  ;;  %540 = vmatpush.bf16.msra.mxu1 %v849_v58 }
 0x119   :  { %850 = vmatmul.msk.bf16.vlgmr.msrb.gmra.mxu2 %vm110_vm0, %v1153_v8 }
 0x11a   :  { %818 = vmatmul.msk.bf16.vlgmr.msrb.gmra.mxu1 %vm333_vm6, %v280_v60  ;;  %v859_v60 = vor.u32 %v937_v57, %v856_v59 }
 0x11c   :  { %579 = vmatpush.bf16.msrb.mxu0 %v859_v60 }
 0x12a   :  { %v225_v61 = vpop.f32.mrf.mxu3  ;;  %851 = vmatmul.msk.bf16.vlgmr.msra.gmra.mxu1 %vm110_vm0, %v1153_v8 }
 0x12b   :  { %v226_v4 = vadd.f32 %v960_v63, %v225_v61  ;;  %v948_v61 = vld [vmem:[#allocation2 + $0x38] sm:$0xff]  ;;  %v947_v63 = vld [vmem:[#allocation2 + $0x30] sm:$0xff] }
 0x12c   :  { %709 = vmatpush.bf16.msra.mxu2 %v948_v61 }
 0x130   :  { %710 = vmatpush.bf16.msra.mxu2 %v947_v63 }
 0x132   :  { %v227_v62 = vpop.f32.mrf.mxu3 }
 0x133   :  { %v953_v62 = vld [vmem:[#allocation2 + $0x60] sm:$0xff] }
 0x134   :  { %725 = vmatpush.bf16.msrb.mxu1 %v953_v62 }
 0x194   :  { %v429_v0 = vpop.f32.mrf.mxu3 }
 0x195   :  { %v430_v6 = vadd.f32 %v961_v2, %v429_v0  ;;  %v952_v0 = vld [vmem:[#allocation2 + $0x58] sm:$0xff]  ;;  %v951_v2 = vld [vmem:[#allocation2 + $0x50] sm:$0xff] }
 0x196   :  { %726 = vmatpush.bf16.msrb.mxu1 %v952_v0 }
 0x197   :  { %v346_v3 = vpop.f32.mrf.mxu1 }
 0x198   :  { %v347_v5 = vadd.f32 %v962_v1, %v346_v3  ;;  %v946_v1 = vld [vmem:[#allocation2 + $0x28] sm:$0xff]  ;;  %v945_v3 = vld [vmem:[#allocation2 + $0x20] sm:$0xff] }
 0x199   :  { %711 = vmatpush.bf16.msra.mxu2 %v946_v1 }
 0x19a   :  { %v433_v7 = vmax.f32 %v226_v4, %v347_v5  ;;  %727 = vmatpush.bf16.msrb.mxu1 %v951_v2 }
 0x19c   :  { %v434_v9 = vmax.f32 %v433_v7, %v430_v6  ;;  %v431_v10 = vpop.f32.mrf.mxu3 }
 0x19d   :  { %712 = vmatpush.bf16.msra.mxu2 %v945_v3 }
 0x19e   :  { %v435_v11 = vsub.f32 %v226_v4, %v434_v9  ;;  %v438_v12 = vsub.f32 %v347_v5, %v434_v9  ;;  %v441_v13 = vsub.f32 %v430_v6, %v434_v9 }
 0x19f   :  { %v348_v14 = vpop.f32.mrf.mxu1 }
 0x1a0   :  { %v436_v16 = vmul.f32 1.442695, %v435_v11  ;;  %v439_v17 = vmul.f32 1.442695, %v438_v12  ;;  %v442_v18 = vmul.f32 1.442695, %v441_v13 }
 0x1a1   :  { %v944_v11 = vld [vmem:[#allocation2 + $0x18] sm:$0xff]  ;;  %v950_v13 = vld [vmem:[#allocation2 + $0x48] sm:$0xff]  ;;  %v943_v14 = vld [vmem:[#allocation2 + $0x10] sm:$0xff] }
 0x1a2   :  { %965 = vpow2.f32 %v436_v16  ;;  %713 = vmatpush.bf16.msra.mxu2 %v944_v11  ;;  %728 = vmatpush.bf16.msrb.mxu1 %v950_v13  ;;  %v942_v16 = vld [vmem:[#allocation2 + $0x8] sm:$0xff] }
 0x1a3   :  { %967 = vpow2.f32 %v439_v17 }
 0x1a4   :  { %969 = vpow2.f32 %v442_v18  ;;  %v941_v18 = vld [vmem:[#allocation2] sm:$0xff] }
 0x1a6   :  { %714 = vmatpush.bf16.msra.mxu2 %v943_v14  ;;  %729 = vmatpush.bf16.msrb.mxu1 %v949_v15 }
 0x1a7   :  { %v542_v12 = vpop.f32.mrf.mxu1 }
 0x1a8   :  { %v966_v19 = vpop.eup %965 }
 0x1a9   :  { %v968_v20 = vpop.eup %967  ;;  %v444_v25 = vmul.f32 %v966_v19, %v226_v4  ;;  %v529_v4 = vpop.f32.mrf.mxu2 }
 0x1aa   :  { %v445_v21 = vadd.f32 %v968_v20, %v966_v19  ;;  %v970_v22 = vpop.eup %969  ;;  %v446_v26 = vmul.f32 %v968_v20, %v347_v5  ;;  %v495_v5 = vld [vmem:[%s1342_s21] sm:$0xff]  ;;  %715 = vmatpush.bf16.msra.mxu2 %v942_v16 }
 0x1ab   :  { %v449_v33 = vmul.f32 %v970_v22, %v430_v6  ;;  %v585_v19 = vld [vmem:[%s1320_s20] sm:$0x3] }
 0x1ac   :  { %v448_v23 = vadd.f32 %v970_v22, %v445_v21  ;;  %v447_v30 = vadd.f32 %v446_v26, %v444_v25  ;;  %v588_v20 = vperm.slane %v585_v19, 1  ;;  %v587_v25 = vperm.slane %v585_v19, 0 }
 0x1ae   :  { %971 = vrcp.f32 %v448_v23  ;;  %v462_v29 = vand.u32 2147483648, %v448_v23  ;;  %v460_v32 = vand.u32 2147483647, %v448_v23  ;;  %vm456_vm8 = vweird.f32 %v448_v23  ;;  %716 = vmatpush.bf16.msra.mxu2 %v941_v18 }
 0x1af   :  { %v450_v36 = vadd.f32 %v449_v33, %v447_v30  ;;  %v544_v17 = vpop.f32.mrf.mxu1 }
 0x1b0   :  { %v463_v35 = vor.u32 1.1754944e-38, %v462_v29  ;;  %vm461_vm10 = vcmp.eq.f32.partialorder %v460_v32, 8.507059e+37 }
 0x1b1   :  { %v531_v6 = vpop.f32.mrf.mxu2 }
 0x1b4   :  { %v972_v24 = vpop.eup %971 }
 0x1b5   :  { %v452_v27 = vmul.f32 %v972_v24, %v448_v23  ;;  %vm457_vm7 = vweird.f32 %v972_v24 }
 0x1b6   :  { %vm458_vm9 = vmor %vm456_vm8, %vm457_vm7 }
 0x1b7   :  { %v453_v28 = vsub.f32 1.0, %v452_v27 }
 0x1b9   :  { %v454_v31 = vmul.f32 %v972_v24, %v453_v28 }
 0x1bb   :  { %v455_v34 = vadd.f32 %v972_v24, %v454_v31 }
 0x1bd   :  { %v459_v37 = vsel %vm458_vm9, %v972_v24, %v455_v34 }
 0x1be   :  { %v464_v38 = vsel %vm461_vm10, %v463_v35, %v459_v37 }
 0x1bf   :  { %v465_v39 = vmul.f32 %v464_v38, %v450_v36  ;;  %v964_v36 = vld [vmem:[%s1322_s22] ss:$0 sm:$0xff] }
 0x1c1   :  { %v466_v40 = vpack.c.bf16 %v465_v39, %v465_v39 }
 0x1c3   :  { %841 = vmatmul.msk.bf16.vlgmr.msra.gmra.mxu0 %vm110_vm0, %v466_v40 }
 0x240   :  { %v491_v49 = vpop.f32.mrf.mxu0 }
 0x241   :  { %v492_v50 = vadd.f32 %v963_v48, %v491_v49 }
 0x243   :  { %v496_v51 = vmul.f32 0.5, %v492_v50  ;;  %739 = vst.msk [vmem:[%s1323_s23 + $0x8] sm:$0xff] %vm157_vm2, %v492_v50 }
 0x245   :  { %v497_v52 = vmul.f32 1.442695, %v496_v51 }
 0x247   :  { %973 = vpow2.f32 %v497_v52 }
 0x248   :  { %v493_v53 = vpop.f32.mrf.mxu0 }
 0x24d   :  { %v974_v54 = vpop.eup %973 }
 0x24e   :  { %500 = vrot.lane.b32.xlu1 %v974_v54, %s1006_s2 }
 0x2c0   :  { %v501_v7 = vpop.permute.xlu1 %500 }
 0x2c1   :  { %v503_v8 = vmul.f32 %v501_v7, %v495_v5 }
 0x2c3   :  { %v504_v9 = vadd.f32 %v503_v8, %v492_v50 }
 0x2c5   :  { %v505_v10 = vpack.c.bf16 %v504_v9, %v504_v9 }
 0x2c7   :  { %860 = vmatmul.msk.bf16.vlgmr.msrb.gmra.mxu3 %vm110_vm0, %v505_v10  ;;  %861 = vmatmul.msk.bf16.vlgmr.msrb.gmra.mxu0 %vm110_vm0, %v505_v10 }
 0x344   :  { %v581_v21 = vpop.f32.mrf.mxu0 }
 0x345   :  { %v582_v22 = vadd.f32 %v581_v21, %v542_v12 }
 0x347   :  { %v592_v23 = vadd.f32 %v588_v20, %v582_v22 }
 0x349   :  { %v594_v24 = vmax.f32 %v592_v23, 0.0 }
 0x34a   :  { %v568_v26 = vpop.f32.mrf.mxu3 }
 0x34b   :  { %v596_v27 = vpack.c.bf16 %v594_v24, %v594_v24  ;;  %v569_v28 = vadd.f32 %v568_v26, %v529_v4 }
 0x34c   :  { %v583_v29 = vpop.f32.mrf.mxu0 }
 0x34d   :  { %v591_v30 = vadd.f32 %v587_v25, %v569_v28  ;;  %914 = vmatmul.msk.bf16.vlgmr.msrb.gmra.mxu1 %vm705_vm11, %v596_v27 }
 0x34f   :  { %v593_v31 = vmax.f32 %v591_v30, 0.0 }
 0x351   :  { %v595_v32 = vpack.c.bf16 %v593_v31, %v593_v31 }
 0x352   :  { %v570_v33 = vpop.f32.mrf.mxu3 }
 0x353   :  { %717 = vmatmul.bf16.vlgmr.msra.gmra.mxu2 %v595_v32 }
 0x3ca   :  { %v731_v34 = vpop.f32.mrf.mxu1 }
 0x3d2   :  { %v733_v35 = vpop.f32.mrf.mxu1 }
 0x3d6   :  { %v718_v37 = vpop.f32.mrf.mxu2 }
 0x3d7   :  { %v719_v38 = vadd.f32 %v964_v36, %v718_v37 }
 0x3d9   :  { %v732_v39 = vadd.f32 %v731_v34, %v719_v38 }
 0x3db   :  { %738 = vst.msk [vmem:[%s1323_s23] sm:$0xff] %vm737_vm12, %v732_v39 }
 0x3de   :  { %v720_v40 = vpop.f32.mrf.mxu2 }
 0x3df   :  { %744 = vsyncpa [#allocation3], 1 }

</bundles_post_ra>
